<compile_context>
chip_gen: v7x
topology: tpu7x:2x2x1
jax: 0.10.0
libtpu: 0.0.40
codegen_flags: <defaults>
</compile_context>

<pallas_src>
import numpy as np
import jax
import jax.numpy as jnp
from jax import lax
from jax.experimental import pallas as pl
from jax.experimental.pallas import tpu as pltpu


def _round_up(x, m):
    return ((x + m - 1) // m) * m


# ----------------------------------------------------------------------------
# Pallas kernel: one (batch, tile-pair) grid step.
#   expo = phiT_i^T @ psiT_j         (TILE, TILE)   MXU   (= -0.5||f_p-f_q||^2)
#   W    = exp(expo)                 (TILE, TILE)   EUP
#   R    = V_j @ W^T                 (2K,  TILE)    MXU   (contraction TILE)
#   partial = scale * sum(U_i * R)   scale = 0.5 on diagonal tile pairs
# ----------------------------------------------------------------------------
def _dense_energy_pair_kernel(ii_ref, jj_ref, phit_ref, psit_ref, u_ref, v_ref,
                              out_ref):
    t = pl.program_id(1)

    phit = phit_ref[0]    # (F, TILE)   augmented features, tile i (lane-dense)
    psit = psit_ref[0]    # (F, TILE)   augmented features (dual aug), tile j
    u = u_ref[0]          # (2K, TILE)  [gate*seg ; seg], tile i
    v = v_ref[0]          # (2K, TILE)  [seg ; gate*seg], tile j

    # Full exponent directly from the MXU (always <= 0, no overflow risk).
    expo = lax.dot_general(phit, psit, (((0,), (0,)), ((), ())),
                           preferred_element_type=jnp.float32)   # (TILE, TILE)
    w = jnp.exp(expo)

    # Gate-weighted reduction as a second MXU matmul (contraction over q/TILE):
    #   r[k, p] = sum_q v[k, q] * w[p, q]
    r = lax.dot_general(v, w, (((1,), (1,)), ((), ())),
                        preferred_element_type=jnp.float32)       # (2K, TILE)

    # Off-diagonal tile pairs cover both ordered (p,q) and (q,p); diagonal tile
    # pairs would double-count, so halve them.
    scale = jnp.where(ii_ref[t] == jj_ref[t], 0.5, 1.0)
    partial = scale * jnp.sum(u * r)
    out_ref[...] = jnp.broadcast_to(partial, out_ref.shape)


def _dense_energy_dot_pallas(phit, psit, u, v, tile):
    """Returns sum_{n,p,q,k} w[n,p,q] * gate[n,p] * s[n,k,p] * s[n,k,q]."""
    N, F, P = phit.shape
    K2 = u.shape[1]
    n_tiles = P // tile

    # Upper-triangular tile pairs (j >= i), flattened into one grid axis.
    ti, tj = np.triu_indices(n_tiles)
    T = int(ti.shape[0])
    ii = jnp.asarray(ti, dtype=jnp.int32)
    jj = jnp.asarray(tj, dtype=jnp.int32)

    out = pl.pallas_call(
        _dense_energy_pair_kernel,
        out_shape=jax.ShapeDtypeStruct((N, T, 1, 128), jnp.float32),
        grid_spec=pltpu.PrefetchScalarGridSpec(
            num_scalar_prefetch=2,
            grid=(N, T),
            in_specs=[
                pl.BlockSpec((1, F, tile), lambda n, t, ii, jj: (n, 0, ii[t])),
                pl.BlockSpec((1, F, tile), lambda n, t, ii, jj: (n, 0, jj[t])),
                pl.BlockSpec((1, K2, tile), lambda n, t, ii, jj: (n, 0, ii[t])),
                pl.BlockSpec((1, K2, tile), lambda n, t, ii, jj: (n, 0, jj[t])),
            ],
            out_specs=pl.BlockSpec((1, 1, 1, 128),
                                   lambda n, t, ii, jj: (n, t, 0, 0)),
        ),
        compiler_params=pltpu.CompilerParams(
            dimension_semantics=("parallel", "parallel"),
            vmem_limit_bytes=32 * 1024 * 1024),
    )(ii, jj, phit, psit, u, v)

    return jnp.sum(out[:, :, 0, 0])


# ----------------------------------------------------------------------------
# Glue: PyTorch-compatible interpolation + gate construction (plain JAX)
# ----------------------------------------------------------------------------
def _nearest_resize_nchw(x, out_h, out_w):
    # PyTorch F.interpolate(mode='nearest'): src = floor(dst * in/out)
    H, W = x.shape[-2], x.shape[-1]
    yi = jnp.floor(jnp.arange(out_h) * (H / out_h)).astype(jnp.int32)
    xi = jnp.floor(jnp.arange(out_w) * (W / out_w)).astype(jnp.int32)
    x = jnp.take(x, yi, axis=-2)
    return jnp.take(x, xi, axis=-1)


def _bilinear_resize_nchw(x, out_h, out_w):
    # PyTorch F.interpolate(mode='bilinear', align_corners=False)
    H, W = x.shape[-2], x.shape[-1]

    def coords(out_size, in_size):
        c = (jnp.arange(out_size, dtype=jnp.float32) + 0.5) * (in_size / out_size) - 0.5
        c = jnp.clip(c, 0.0, in_size - 1)
        lo = jnp.floor(c).astype(jnp.int32)
        hi = jnp.minimum(lo + 1, in_size - 1)
        frac = c - lo.astype(jnp.float32)
        return lo, hi, frac

    y0, y1, fy = coords(out_h, H)
    x0, x1, fx = coords(out_w, W)

    top = jnp.take(x, y0, axis=-2)
    bot = jnp.take(x, y1, axis=-2)

    def interp_w(rows):
        left = jnp.take(rows, x0, axis=-1)
        right = jnp.take(rows, x1, axis=-1)
        return left * (1.0 - fx) + right * fx

    top = interp_w(top)
    bot = interp_w(bot)
    fy = fy[:, None]
    return top * (1.0 - fy) + bot * fy


def _preprocess(images, segmentations, ROIs, seg_label, sigma_rgb, sigma_xy,
                scale_factor):
    """Scaling, gate construction, ROI masking.  Returns:
       feat (N,P,Fraw), seg (N,K,P), gate (N,1,P)   (K-major for seg/gate)."""
    N, C, H, W = images.shape
    K = segmentations.shape[1]
    out_h = int(np.floor(H * scale_factor))
    out_w = int(np.floor(W * scale_factor))

    scaled_images = _nearest_resize_nchw(images, out_h, out_w)                   # (N,C,h,w)
    scaled_segs = _bilinear_resize_nchw(segmentations, out_h, out_w)             # (N,K,h,w)
    scaled_rois = _nearest_resize_nchw(ROIs[:, None, :, :], out_h, out_w)[:, 0]  # (N,h,w)
    scaled_label = _nearest_resize_nchw(seg_label, out_h, out_w)                 # (N,1,h,w)
    unlabel = (scaled_label.astype(jnp.int32) == 255)[:, 0]                      # (N,h,w)

    sigma_xy_eff = sigma_xy * scale_factor

    # Gate: ROI - max_k seg, unlabeled pixels forced to 1, clipped at 0
    seg_max = jnp.max(scaled_segs, axis=1)
    gate = scaled_rois - seg_max
    gate = jnp.where(unlabel, 1.0, gate)
    gate = jnp.maximum(gate, 0.0)

    seg_masked = scaled_segs * scaled_rois[:, None]                              # (N,K,h,w)

    P = out_h * out_w
    ys, xs = jnp.meshgrid(jnp.arange(out_h, dtype=jnp.float32),
                          jnp.arange(out_w, dtype=jnp.float32), indexing="ij")
    spatial = jnp.stack([xs / sigma_xy_eff, ys / sigma_xy_eff], axis=-1).reshape(P, 2)
    color = (scaled_images / sigma_rgb).reshape(N, C, P).transpose(0, 2, 1)      # (N,P,C)
    feat = jnp.concatenate([jnp.broadcast_to(spatial[None], (N, P, 2)), color],
                           axis=-1)                                              # (N,P,2+C)

    seg_kp = seg_masked.reshape(N, K, P)                                         # (N,K,P)
    gate_p = gate.reshape(N, 1, P)                                               # (N,1,P)
    return (feat.astype(jnp.float32), seg_kp.astype(jnp.float32),
            gate_p.astype(jnp.float32))


def dense_energy_loss(images, segmentations, ROIs, seg_label, *,
                      weight, sigma_rgb, sigma_xy, scale_factor, tile=1024):
    """Forward pass of DenseEnergyLoss. Returns shape (1,) float32 like torch."""
    N = images.shape[0]
    feat, seg_kp, gate = _preprocess(images, segmentations, ROIs, seg_label,
                                     sigma_rgb, sigma_xy, scale_factor)
    P = feat.shape[1]

    # Mean-center features per image (pairwise distances are translation-
    # invariant) so the augmented-dot exponent doesn't cancel catastrophically.
    feat = feat - jnp.mean(feat, axis=1, keepdims=True)

    # Tile along P: multiple of 128, capped by tile, P padded to a multiple.
    # (tile=1024 in f32 keeps the two resident (TILE,TILE) intermediates at
    #  ~8 MiB, within scoped VMEM on v5e/v6e/v7x.)
    tile_eff = min(tile, _round_up(P, 128))
    tile_eff = max(128, _round_up(tile_eff, 128))
    P_pad = _round_up(P, tile_eff)
    if P_pad != P:
        pad = P_pad - P
        feat = jnp.pad(feat, ((0, 0), (0, pad), (0, 0)))     # zero feat -> exp<=1
        seg_kp = jnp.pad(seg_kp, ((0, 0), (0, 0), (0, pad))) # zero seg  -> no contribution
        gate = jnp.pad(gate, ((0, 0), (0, 0), (0, pad)))     # zero gate -> no contribution

    # Augmented features so the full exponent comes out of one matmul:
    #   phi_p . psi_q = f_p.f_q - 0.5||f_p||^2 - 0.5||f_q||^2 = -0.5||f_p-f_q||^2
    hn = -0.5 * jnp.sum(feat * feat, axis=-1, keepdims=True)      # (N,P_pad,1)
    ones = jnp.ones_like(hn)
    f_aug = _round_up(feat.shape[-1] + 2, 8)
    pad_f = f_aug - (feat.shape[-1] + 2)
    phi = jnp.concatenate([feat, hn, ones], axis=-1)
    psi = jnp.concatenate([feat, ones, hn], axis=-1)
    if pad_f:
        phi = jnp.pad(phi, ((0, 0), (0, 0), (0, pad_f)))
        psi = jnp.pad(psi, ((0, 0), (0, 0), (0, pad_f)))
    phit = phi.transpose(0, 2, 1)                                  # (N,F,P_pad) lane-dense
    psit = psi.transpose(0, 2, 1)                                  # (N,F,P_pad) lane-dense

    # Gate folded into the seg operands (K-major, pixels on lanes).
    gs = gate * seg_kp
    u = jnp.concatenate([gs, seg_kp], axis=1)                      # (N,2K,P_pad)
    v = jnp.concatenate([seg_kp, gs], axis=1)                      # (N,2K,P_pad)
    K2 = u.shape[1]
    K2_pad = _round_up(K2, 8)
    if K2_pad != K2:                                               # sublane-align 2K
        u = jnp.pad(u, ((0, 0), (0, K2_pad - K2), (0, 0)))
        v = jnp.pad(v, ((0, 0), (0, K2_pad - K2), (0, 0)))

    dot = _dense_energy_dot_pallas(phit, psit, u, v, tile_eff)
    loss = -dot / N
    return jnp.reshape(weight * loss, (1,)).astype(jnp.float32)


def dense_energy_loss_reference(images, segmentations, ROIs, seg_label, *,
                                weight, sigma_rgb, sigma_xy, scale_factor):
    """Plain-JAX brute force reference (same math, no Pallas)."""
    # TODO(synk): the original C++ bilateralfilter_batch uses a permutohedral-
    # lattice approximation with normalization; here the exact dense bilateral
    # Gaussian filter (including the w[p,p]=1 self term) is used.
    N = images.shape[0]
    feat, seg_kp, gate = _preprocess(images, segmentations, ROIs, seg_label,
                                     sigma_rgb, sigma_xy, scale_factor)
    d2 = jnp.sum((feat[:, :, None, :] - feat[:, None, :, :]) ** 2, axis=-1)  # (N,P,P)
    w = jnp.exp(-0.5 * d2)
    AS = jnp.einsum("npq,nkq->nkp", w, seg_kp)
    dot = jnp.sum(seg_kp * gate * AS)
    return jnp.reshape(weight * (-dot / N), (1,)).astype(jnp.float32)


if __name__ == "__main__":
    key = jax.random.PRNGKey(0)
    k1, k2, k3, k4, k5 = jax.random.split(key, 5)

    N, C, H, W = 2, 3, 16, 16
    K = 4
    weight, sigma_rgb, sigma_xy, scale_factor = 2.0, 15.0, 80.0, 0.5

    images = jax.random.uniform(k1, (N, C, H, W), jnp.float32) * 255.0
    segs = jax.nn.softmax(jax.random.normal(k2, (N, K, H, W), jnp.float32), axis=1)
    rois = (jax.random.uniform(k3, (N, H, W)) > 0.2).astype(jnp.float32)
    labels = jax.random.randint(k4, (N, 1, H, W), 0, K).astype(jnp.float32)
    labels = jnp.where(jax.random.uniform(k5, (N, 1, H, W)) > 0.7, 255.0, labels)

    loss = dense_energy_loss(images, segs, rois, labels,
                             weight=weight, sigma_rgb=sigma_rgb,
                             sigma_xy=sigma_xy, scale_factor=scale_factor)
    loss = jax.block_until_ready(loss)

    ref = dense_energy_loss_reference(images, segs, rois, labels,
                                      weight=weight, sigma_rgb=sigma_rgb,
                                      sigma_xy=sigma_xy, scale_factor=scale_factor)
    ref = jax.block_until_ready(ref)

    assert np.allclose(np.asarray(loss), np.asarray(ref), rtol=2e-4, atol=1e-5), (loss, ref)
    print("KERNEL_OK")
</pallas_src>

<mosaic_0001>
module attributes {stable_mosaic.version = 11 : i64} {
  func.func @_dense_energy_pair_kernel(%arg0: i32, %arg1: i32, %arg2: memref<1xi32, #tpu.memory_space<smem>>, %arg3: memref<1xi32, #tpu.memory_space<smem>>, %arg4: memref<1x8x128xf32, #tpu.memory_space<vmem>>, %arg5: memref<1x8x128xf32, #tpu.memory_space<vmem>>, %arg6: memref<1x8x128xf32, #tpu.memory_space<vmem>>, %arg7: memref<1x8x128xf32, #tpu.memory_space<vmem>>, %arg8: memref<1x1x1x128xf32, #tpu.memory_space<vmem>>) attributes {dimension_semantics = [#tpu.dimension_semantics<parallel>, #tpu.dimension_semantics<parallel>], iteration_bounds = array<i64: 2, 1>, scalar_prefetch = 2 : i64, scratch_operands = 0 : i64, tpu.core_type = #tpu.core_type<tc>, window_params = [{transform_indices = @transform_0, window_bounds = array<i64: 1, 8, 128>}, {transform_indices = @transform_1, window_bounds = array<i64: 1, 8, 128>}, {transform_indices = @transform_2, window_bounds = array<i64: 1, 8, 128>}, {transform_indices = @transform_3, window_bounds = array<i64: 1, 8, 128>}, {transform_indices = @transform_4, window_bounds = array<i64: 1, 1, 1, 128>}]} {
    %c0 = arith.constant 0 : index
    %c0_0 = arith.constant 0 : index
    %c0_1 = arith.constant 0 : index
    %0 = vector.load %arg4[%c0, %c0_0, %c0_1] : memref<1x8x128xf32, #tpu.memory_space<vmem>>, vector<1x8x128xf32>
    %1 = vector.shape_cast %0 : vector<1x8x128xf32> to vector<8x128xf32>
    %c0_2 = arith.constant 0 : index
    %c0_3 = arith.constant 0 : index
    %c0_4 = arith.constant 0 : index
    %2 = vector.load %arg5[%c0_2, %c0_3, %c0_4] : memref<1x8x128xf32, #tpu.memory_space<vmem>>, vector<1x8x128xf32>
    %3 = vector.shape_cast %2 : vector<1x8x128xf32> to vector<8x128xf32>
    %c0_5 = arith.constant 0 : index
    %c0_6 = arith.constant 0 : index
    %c0_7 = arith.constant 0 : index
    %4 = vector.load %arg6[%c0_5, %c0_6, %c0_7] : memref<1x8x128xf32, #tpu.memory_space<vmem>>, vector<1x8x128xf32>
    %5 = vector.shape_cast %4 : vector<1x8x128xf32> to vector<8x128xf32>
    %c0_8 = arith.constant 0 : index
    %c0_9 = arith.constant 0 : index
    %c0_10 = arith.constant 0 : index
    %6 = vector.load %arg7[%c0_8, %c0_9, %c0_10] : memref<1x8x128xf32, #tpu.memory_space<vmem>>, vector<1x8x128xf32>
    %7 = vector.shape_cast %6 : vector<1x8x128xf32> to vector<8x128xf32>
    %cst = arith.constant dense<0.000000e+00> : vector<128x128xf32>
    %8 = tpu.matmul %1, %3, %cst {dimension_numbers = #tpu.dot_dimension_numbers<[0], [0], [1], [1], [0, 1, 1, 1], [], []>} : vector<8x128xf32>, vector<8x128xf32>, vector<128x128xf32> -> vector<128x128xf32>
    %9 = math.exp %8 : vector<128x128xf32>
    %cst_11 = arith.constant dense<0.000000e+00> : vector<8x128xf32>
    %10 = tpu.matmul %7, %9, %cst_11 {dimension_numbers = #tpu.dot_dimension_numbers<[1], [1], [0], [0], [0, 0, 1, 0], [], []>} : vector<8x128xf32>, vector<128x128xf32>, vector<8x128xf32> -> vector<8x128xf32>
    %11 = arith.index_cast %arg1 : i32 to index
    %12 = memref.load %arg2[%11] : memref<1xi32, #tpu.memory_space<smem>>
    %13 = arith.index_cast %arg1 : i32 to index
    %14 = memref.load %arg3[%13] : memref<1xi32, #tpu.memory_space<smem>>
    %15 = arith.cmpi eq, %12, %14 : i32
    %cst_12 = arith.constant 5.000000e-01 : f32
    %cst_13 = arith.constant 1.000000e+00 : f32
    %16 = arith.select %15, %cst_12, %cst_13 : f32
    %17 = arith.mulf %5, %10 : vector<8x128xf32>
    %18 = vector.shape_cast %17 : vector<8x128xf32> to vector<1x8x128xf32>
    %cst_14 = arith.constant dense<0.000000e+00> : vector<1xf32>
    %19 = vector.multi_reduction <add>, %18, %cst_14 [1, 2] : vector<1x8x128xf32> to vector<1xf32>
    %20 = vector.shape_cast %19 : vector<1xf32> to vector<1x1x1xf32>
    %21 = vector.extract %20[0, 0, 0] : f32 from vector<1x1x1xf32>
    %22 = arith.mulf %16, %21 : f32
    %23 = vector.broadcast %22 : f32 to vector<1x1x1x128xf32>
    %c0_15 = arith.constant 0 : index
    %c0_16 = arith.constant 0 : index
    %c0_17 = arith.constant 0 : index
    %c0_18 = arith.constant 0 : index
    %24 = vector.load %arg8[%c0_15, %c0_16, %c0_17, %c0_18] : memref<1x1x1x128xf32, #tpu.memory_space<vmem>>, vector<1x1x1x128xf32>
    tpu.vector_store %arg8[%c0_15, %c0_16, %c0_17, %c0_18], %23 {strides = array<i32>} : memref<1x1x1x128xf32, #tpu.memory_space<vmem>>, vector<1x1x1x128xf32>,
    return
  }
  func.func @transform_0(%arg0: i32, %arg1: i32, %arg2: memref<1xi32, #tpu.memory_space<smem>>, %arg3: memref<1xi32, #tpu.memory_space<smem>>) -> (i32, i32, i32) {
    %0 = arith.index_cast %arg1 : i32 to index
    %1 = memref.load %arg2[%0] : memref<1xi32, #tpu.memory_space<smem>>
    %c0_i32 = arith.constant 0 : i32
    %c0_i32_0 = arith.constant 0 : i32
    return %arg0, %c0_i32, %1 : i32, i32, i32
  }
  func.func @transform_1(%arg0: i32, %arg1: i32, %arg2: memref<1xi32, #tpu.memory_space<smem>>, %arg3: memref<1xi32, #tpu.memory_space<smem>>) -> (i32, i32, i32) {
    %0 = arith.index_cast %arg1 : i32 to index
    %1 = memref.load %arg3[%0] : memref<1xi32, #tpu.memory_space<smem>>
    %c0_i32 = arith.constant 0 : i32
    %c0_i32_0 = arith.constant 0 : i32
    return %arg0, %c0_i32, %1 : i32, i32, i32
  }
  func.func @transform_2(%arg0: i32, %arg1: i32, %arg2: memref<1xi32, #tpu.memory_space<smem>>, %arg3: memref<1xi32, #tpu.memory_space<smem>>) -> (i32, i32, i32) {
    %0 = arith.index_cast %arg1 : i32 to index
    %1 = memref.load %arg2[%0] : memref<1xi32, #tpu.memory_space<smem>>
    %c0_i32 = arith.constant 0 : i32
    %c0_i32_0 = arith.constant 0 : i32
    return %arg0, %c0_i32, %1 : i32, i32, i32
  }
  func.func @transform_3(%arg0: i32, %arg1: i32, %arg2: memref<1xi32, #tpu.memory_space<smem>>, %arg3: memref<1xi32, #tpu.memory_space<smem>>) -> (i32, i32, i32) {
    %0 = arith.index_cast %arg1 : i32 to index
    %1 = memref.load %arg3[%0] : memref<1xi32, #tpu.memory_space<smem>>
    %c0_i32 = arith.constant 0 : i32
    %c0_i32_0 = arith.constant 0 : i32
    return %arg0, %c0_i32, %1 : i32, i32, i32
  }
  func.func @transform_4(%arg0: i32, %arg1: i32, %arg2: memref<1xi32, #tpu.memory_space<smem>>, %arg3: memref<1xi32, #tpu.memory_space<smem>>) -> (i32, i32, i32, i32) {
    %c0_i32 = arith.constant 0 : i32
    %c0_i32_0 = arith.constant 0 : i32
    %c0_i32_1 = arith.constant 0 : i32
    return %arg0, %arg1, %c0_i32, %c0_i32_0 : i32, i32, i32, i32
  }
}

</mosaic_0001>

<bundles_post_ra>
// kernel: tpu_custom_call.1
= control target key start
LH: loop header
LB: loop body
LE: loop exit
PB: predicated region body
PF: predicated region fallthrough
CT: control target
= control target key end

     0   :  { %s1935_s0 = inlined_call_operand.<no memory space> [shape: s32[1], index: 0, kind: input, shape index: {}]   ;;  %s1936_s1 = inlined_call_operand.<no memory space> [shape: s32[1], index: 1, kind: input, shape index: {}]   ;;  %s1937_s2 = inlined_call_operand.hbm [shape: f32[2,8,128], index: 2, kind: input, shape index: {}]   ;;  %s1938_s3 = inlined_call_operand.hbm [shape: f32[2,8,128], index: 3, kind: input, shape index: {}]   ;;  %s1939_s4 = inlined_call_operand.hbm [shape: f32[2,8,128], index: 4, kind: input, shape index: {}]   ;;  %s1940_s5 = inlined_call_operand.vmem [shape: f32[2,8,128], index: 5, kind: input, shape index: {}]   ;;  %s1941_s6 = inlined_call_operand.hbm [shape: f32[2,1,1,128], index: 6, kind: output, shape index: {}]  }
   0x1   :  { %1958 = sst [smem:[#allocation25_spill]] %s1938_s3 }
   0x2   :  { %1959 = sst [smem:[#allocation26_spill]] %s1940_s5 }
   0x3   :  { %1960 = sst [smem:[#allocation27_spill]] %s1941_s6 }
   0x4   :  { %11 = sst [smem:[#allocation3]] %s1935_s0 }
   0x5   :  { %12 = sst [smem:[#allocation4]] %s1936_s1 }
   0x6   :  { %13 = vsyncpa [#allocation6], 0 }
   0x7   :  { %15 = vsyncpa [#allocation6 + $0x1], 0 }
   0x8   :  { %16 = vsyncpa [#allocation9], 0 }
   0x9   :  { %18 = vsyncpa [#allocation9 + $0x1], 0 }
   0xa   :  { %19 = vsyncpa [#allocation7], 0 }
   0xb   :  { %21 = vsyncpa [#allocation7 + $0x1], 0  ;;  %s1492_s25 = smov 0   ;;  %s1494_s26 = smov 0  }
   0xc   :  { %s1496_s27 = smov 0   ;;  %s1498_s28 = smov 0  }
   0xd   :  { %s1500_s29 = smov 0   ;;  %s1502_s0 = smov 0  }
   0xe   :  { %s1504_s30 = smov 0   ;;  %s1506_s1 = smov 0  }
   0xf   :  { %s1508_s7 = smov 0   ;;  %s1510_s8 = smov 0  }
  0x10   :  { %s1512_s9 = smov 0   ;;  %s1514_s10 = smov 0  }
  0x11   :  { %s1516_s11 = smov 0   ;;  %s1518_s12 = smov 0  }
  0x12   :  { %s1520_s13 = smov 0  }
  0x13 LB: > { %1961 = sst [smem:[#allocation16_spill]] %s1386_s25  ;;  %s1566_s14 = sadd.s32 4294967295, %s1442_s13   ;;  %s1442_s13 = sphi %s1520_s13, %s27_s13   ;;  %s1438_s12 = sphi %s1518_s12, %s2024_s12   ;;  %s1434_s11 = sphi %s1516_s11, %s2023_s11   ;;  %s1430_s10 = sphi %s1514_s10, %s2022_s10   ;;  %s1426_s9 = sphi %s1512_s9, %s2021_s9   ;;  %s1422_s8 = sphi %s1510_s8, %s2020_s8   ;;  %s1418_s7 = sphi %s1508_s7, %s2019_s7   ;;  %s1414_s1 = sphi %s1506_s1, %s2018_s1   ;;  %s1410_s30 = sphi %s1504_s30, %s2017_s30   ;;  %s1406_s0 = sphi %s1502_s0, %s2016_s0   ;;  %s1402_s29 = sphi %s1500_s29, %s2015_s29   ;;  %s1398_s28 = sphi %s1498_s28, %s2014_s28   ;;  %s1394_s27 = sphi %s1496_s27, %s2013_s27   ;;  %s1390_s26 = sphi %s1494_s26, %s2012_s26   ;;  %s1386_s25 = sphi %s1492_s25, %s2004_s25  }
  0x14   : > { %1962 = sst [smem:[#allocation17_spill]] %s1390_s26  ;;  %s857_s15 = sadd.s32 4294967294, %s1442_s13  }
  0x15   : > { %1963 = sst [smem:[#allocation18_spill]] %s1418_s7  ;;  %s39_s16 = sadd.s32 1, %s1438_s12 }
  0x16   : > { %1964 = sst [smem:[#allocation19_spill]] %s1434_s11  ;;  %p1951_p0 = scmp.eq.s32.totalorder %s1442_s13, 0 }
  0x17   : > { %1965 = sst [smem:[#allocation20_spill]] %s1438_s12  ;;  %p41_p1 = scmp.ge.s32.totalorder %s39_s16, 2 }
  0x18   : > { %p1949_p2 = scmp.eq.s32.totalorder %s1566_s14, 0  ;;  %s73_s17 = sld [smem:[#allocation4]] }
  0x19   : > { %s80_s18 = sadd.s32 1, %s1418_s7  ;;  %s2026_s16 = smov (%p41_p1, %s39_s16), 0 }
  0x1a   : > { %1966 = sst [smem:[#allocation21_spill]] %s2026_s16  ;;  %p87_p3 = scmp.ne.s32.totalorder %s1418_s7, %s1414_s1 }
  0x1b   : > { %p93_p4 = scmp.ne.s32.totalorder %s1414_s1, %s1410_s30  ;;  %s45_s19 = ssub.s32 %s1438_s12, %s2026_s16 }
  0x1c   : > { %s168_s20 = sadd.s32 1, %s1394_s27  ;;  %p1583_p5 = por %p87_p3, %p1951_p0 }
  0x1d   : > { %p1589_p6 = por %p93_p4, %p1949_p2  ;;  %p1593_p7 = scmp.eq.s32.totalorder %s45_s19, 0 }
  0x1e   : > { %p178_p8 = scmp.ne.s32.totalorder %s1394_s27, %s1390_s26  ;;  %p179_p9 = scmp.eq.s32.totalorder %s1566_s14, 1 }
  0x1f   : > { %s1968_s22 = scalar_select %p1589_p6, 1, 0 }
  0x20   : > { %p184_p10 = scmp.ne.s32.totalorder %s1390_s26, %s1386_s25  ;;  %p1602_p11 = por %p179_p9, %p178_p8 }
  0x21   : > { %s1609_s30 = scalar_select %p1593_p7, %s1394_s27, %s168_s20  }
  0x22   : > { %s1970_s24 = scalar_select %p1602_p11, 1, 0 }
  0x23   : > { %1972 = sst [smem:[#allocation23_spill]] %s1609_s30  ;;  %p185_p12 = scmp.eq.s32.totalorder %s857_s15, 1 }
  0x24   : > { %1971 = sst [smem:[#allocation22_spill]] %s1970_s24  ;;  %p1950_p1 = scmp.lt.s32.totalorder %s1442_s13, 2 }
  0x25   : > { %s1614_s19 = scalar_select %p1593_p7, %s1418_s7, %s80_s18  }
  0x26   : > { %s225_s16 = sand.u32 1, %s1442_s13   ;;  %p1619_p3 = por %p185_p12, %p184_p10 }
  0x27   : > { %1973 = sst [smem:[#allocation24_spill]] %s1614_s19  ;;  %s227_s6 = sand.u32 1, %s1418_s7  }
  0x28   : > { %s1974_s25 = scalar_select %p1619_p3, 1, 0 }
  0x29   : > { %s234_s26 = sadd.s32 %s1438_s12, %s73_s17  ;;  %s862_s5 = sshll.u32 %s227_s6, 3 }
  0x2a   : > { %s863_s24 = sshll.u32 %s234_s26, 7  ;;  %s1975_s3 = sld [smem:[#allocation25_spill]] }
  0x2b   : > { %s229_s15 = scalar_lea.vmem [#allocation8], %s862_s5  ;;  %p1634_p4 = pnand %p1950_p1, %p1583_p5 }
  0x2c   : > { %s238_s18 = sshll.u32 %s229_s15, 4  ;;  %s1642_s6 = scalar_lea.sflag [#allocation9], %s225_s16  ;;  %s1638_s18 = int_to_ptr.vmem [resolvable:$true] %s238_s18 }
  0x2d   : > { %p1192_p12 = pneg %p1634_p4 }
  0x30   : > { %s1628_s30 = scalar_lea.hbm %s1975_s3, %s863_s24  ;;  %s1195_s17 = scalar_lea.hbm %s1975_s3, 256 }
  0x31   : > { %s1190_s26 = scalar_lea.hbm %s1628_s30, 128  ;;  %p1196_p5 = scmp.lt.u32.totalorder %s1628_s30, %s1975_s3 }
  0x32   : > { %p1191_p10 = scmp.ne.s32.totalorder %s1628_s30, %s1190_s26  ;;  %p1197_p1 = scmp.lt.u32.totalorder %s1195_s17, %s1190_s26 }
  0x33   : > { %p1199_p8 = scmp.lt.u32.totalorder %s1190_s26, %s1628_s30 }
  0x34   : > { %p1193_p13 = pnand %p1192_p12, %p1191_p10  ;;  %p1198_p0 = por %p1197_p1, %p1196_p5 }
  0x36   : > { %p1194_p2 = pneg %p1193_p13  ;;  %p1200_p9 = por %p1199_p8, %p1198_p0 }
  0x38   : > { %p1201_p3 = pnand %p1200_p9, %p1194_p2 }
  0x3a   : > { %1204 = shalt.err (!%p1201_p3)
}
  0x3b   : > { %s1205_s16 = scalar_lea.vmem %s1638_s18, 128  ;;  %s1444_s20 = smov [#allocation8]  }
  0x3c   : > { %p1206_p13 = scmp.ne.s32.totalorder %s1638_s18, %s1205_s16  ;;  %s1210_s15 = sshll.u32 %s1444_s20, 4  ;;  %s1211_s15 = int_to_ptr.vmem [resolvable:$false] %s1210_s15 }
  0x3d   : > { %s1212_s5 = scalar_lea.vmem %s1211_s15, 256  ;;  %p1213_p6 = scmp.lt.s32.totalorder %s1638_s18, %s1211_s15 }
  0x3e   : > { %p1208_p10 = pnand %p1206_p13, %p1192_p12  ;;  %p1214_p1 = scmp.lt.s32.totalorder %s1212_s5, %s1205_s16 }
  0x40   : > { %p1209_p11 = pneg %p1208_p10  ;;  %p1215_p5 = por %p1214_p1, %p1213_p6 }
  0x42   : > { %p1216_p0 = pnand %p1215_p5, %p1209_p11 }
  0x44   : > { %1219 = shalt.err (!%p1216_p0)
}
  0x45   : > { %1025 = dma.hbm_to_vmem [thread:$0]  (!%p1634_p4), %s1628_s30, 128, %s1638_s18, %s1642_s6  }
  0x46   : > { %p1977_p2 = scmp.lt.s32.totalorder %s1442_s13, 3  ;;  %p1978_p6 = scmp.ge.s32.totalorder %s1442_s13, 1 }
  0x47   : > { %s43_s26 = sld [smem:[#allocation3]]  ;;  %s50_s11 = sadd.s32 1, %s1430_s10 }
  0x48   : > { %p1674_p11 = pnand %p1978_p6, %p1977_p2  ;;  %p57_p3 = scmp.ne.s32.totalorder %s1430_s10, %s1426_s9 }
  0x49   : > { %p63_p8 = scmp.ne.s32.totalorder %s1426_s9, %s1422_s8  ;;  %s205_s17 = sand.u32 1, %s1430_s10  }
  0x4a   : > { %s1979_s19 = scalar_select %p1674_p11, 1, 0 }
  0x4b   : > { %p1980_p9 = scmp.eq.s32.totalorder %s1442_s13, 0  ;;  %p1981_p13 = scmp.eq.s32.totalorder %s1566_s14, 0 }
  0x4c   : > { %s860_s30 = sshll.u32 %s205_s17, 3  ;;  %p1983_p4 = scmp.lt.s32.totalorder %s1442_s13, 2 }
  0x4d   : > { %p59_p12 = por %p1980_p9, %p57_p3  ;;  %p1688_p10 = por %p1981_p13, %p63_p8 }
  0x4e   : > { %s214_s24 = sadd.s32 %s1438_s12, %s43_s26  ;;  %s209_s5 = scalar_lea.vmem [#allocation5], %s860_s30 }
  0x4f   : > { %s1982_s21 = scalar_select %p1688_p10, 1, 0 }
  0x50   : > { %p1694_p1 = pnand %p1983_p4, %p59_p12  ;;  %s1699_s16 = sshll.u32 %s214_s24, 7 }
  0x51   : > { %s1705_s15 = scalar_lea.hbm %s1937_s2, %s1699_s16  ;;  %s218_s3 = sshll.u32 %s209_s5, 4  ;;  %s1712_s3 = int_to_ptr.vmem [resolvable:$true] %s218_s3 }
  0x52   : > { %s1710_s7 = scalar_select %p1593_p7, %s1430_s10, %s50_s11  }
  0x53   : > { %s206_s26 = scalar_lea.sflag [#allocation6], %s205_s17  ;;  %s1220_s24 = scalar_lea.hbm %s1705_s15, 128 }
  0x54   : > { %p1221_p5 = scmp.ne.s32.totalorder %s1705_s15, %s1220_s24  ;;  %p1222_p0 = pneg %p1694_p1 }
  0x55   : > { %s1225_s12 = scalar_lea.hbm %s1937_s2, 256  ;;  %p1226_p3 = scmp.lt.u32.totalorder %s1705_s15, %s1937_s2 }
  0x56   : > { %p1223_p2 = pnand %p1222_p0, %p1221_p5  ;;  %p1227_p8 = scmp.lt.u32.totalorder %s1225_s12, %s1220_s24 }
  0x57   : > { %p1229_p12 = scmp.lt.u32.totalorder %s1220_s24, %s1705_s15 }
  0x58   : > { %p1224_p6 = pneg %p1223_p2  ;;  %p1228_p9 = por %p1227_p8, %p1226_p3 }
  0x5a   : > { %p1230_p13 = por %p1229_p12, %p1228_p9 }
  0x5c   : > { %p1231_p4 = pnand %p1230_p13, %p1224_p6 }
  0x5e   : > { %1234 = shalt.err (!%p1231_p4)
}
  0x5f   : > { %s1235_s11 = scalar_lea.vmem %s1712_s3, 128  ;;  %s1445_s17 = smov [#allocation5]  }
  0x60   : > { %p1236_p5 = scmp.ne.s32.totalorder %s1712_s3, %s1235_s11  ;;  %s1240_s8 = sshll.u32 %s1445_s17, 4  ;;  %s1241_s8 = int_to_ptr.vmem [resolvable:$false] %s1240_s8 }
  0x61   : > { %s1242_s20 = scalar_lea.vmem %s1241_s8, 256  ;;  %p1243_p11 = scmp.lt.s32.totalorder %s1712_s3, %s1241_s8 }
  0x62   : > { %p1238_p2 = pnand %p1236_p5, %p1222_p0  ;;  %p1244_p3 = scmp.lt.s32.totalorder %s1242_s20, %s1235_s11 }
  0x64   : > { %p1239_p10 = pneg %p1238_p2  ;;  %p1245_p8 = por %p1244_p3, %p1243_p11 }
  0x66   : > { %p1246_p9 = pnand %p1245_p8, %p1239_p10 }
  0x68   : > { %1249 = shalt.err (!%p1246_p9)
}
  0x69   : > { %1022 = dma.hbm_to_vmem [thread:$0]  (!%p1694_p1), %s1705_s15, 128, %s1712_s3, %s206_s26  }
  0x6a   : > { %s110_s12 = sadd.s32 1, %s1406_s0  ;;  %p117_p11 = scmp.ne.s32.totalorder %s1406_s0, %s1402_s29 }
  0x6b   : > { %s1743_s24 = scalar_select %p1593_p7, %s1406_s0, %s110_s12  }
  0x6c   : > { %p123_p10 = scmp.ne.s32.totalorder %s1402_s29, %s1398_s28  ;;  %s247_s18 = sand.u32 1, %s1406_s0  }
  0x6d   : > { %p1985_p0 = scmp.eq.s32.totalorder %s1442_s13, 0  ;;  %p1986_p12 = scmp.eq.s32.totalorder %s1566_s14, 0 }
  0x6e   : > { %s864_s5 = sshll.u32 %s247_s18, 3  ;;  %s1762_s8 = scalar_lea.hbm %s1939_s4, %s1699_s16 }
  0x6f   : > { %p119_p6 = por %p117_p11, %p1985_p0  ;;  %p1754_p13 = por %p123_p10, %p1986_p12 }
  0x70   : > { %p1988_p1 = scmp.lt.s32.totalorder %s1442_s13, 2  ;;  %s249_s28 = scalar_lea.vmem [#allocation10], %s864_s5 }
  0x71   : > { %s1987_s30 = scalar_select %p1754_p13, 1, 0 }
  0x72   : > { %p1766_p7 = pnand %p1988_p1, %p119_p6  ;;  %s258_s23 = sshll.u32 %s249_s28, 4  ;;  %s259_s23 = int_to_ptr.vmem [resolvable:$true] %s258_s23 }
  0x73   : > { %s1250_s15 = scalar_lea.hbm %s1762_s8, 128  ;;  %s1255_s20 = scalar_lea.hbm %s1939_s4, 256 }
  0x74   : > { %p1251_p4 = scmp.ne.s32.totalorder %s1762_s8, %s1250_s15  ;;  %p1252_p5 = pneg %p1766_p7 }
  0x75   : > { %p1256_p8 = scmp.lt.u32.totalorder %s1762_s8, %s1939_s4  ;;  %p1257_p9 = scmp.lt.u32.totalorder %s1255_s20, %s1250_s15 }
  0x76   : > { %p1253_p2 = pnand %p1252_p5, %p1251_p4  ;;  %p1259_p10 = scmp.lt.u32.totalorder %s1250_s15, %s1762_s8 }
  0x77   : > { %p1258_p11 = por %p1257_p9, %p1256_p8 }
  0x78   : > { %p1254_p3 = pneg %p1253_p2 }
  0x79   : > { %p1260_p0 = por %p1259_p10, %p1258_p11 }
  0x7b   : > { %p1261_p6 = pnand %p1260_p0, %p1254_p3 }
  0x7d   : > { %1264 = shalt.err (!%p1261_p6)
}
  0x7e   : > { %s1265_s5 = scalar_lea.vmem %s259_s23, 128  ;;  %s1446_s11 = smov [#allocation10]  }
  0x7f   : > { %p1266_p12 = scmp.ne.s32.totalorder %s259_s23, %s1265_s5  ;;  %s1270_s17 = sshll.u32 %s1446_s11, 4  ;;  %s1271_s17 = int_to_ptr.vmem [resolvable:$false] %s1270_s17 }
  0x80   : > { %s1272_s28 = scalar_lea.vmem %s1271_s17, 256  ;;  %p1273_p2 = scmp.lt.s32.totalorder %s259_s23, %s1271_s17 }
  0x81   : > { %p1268_p1 = pnand %p1266_p12, %p1252_p5  ;;  %p1274_p13 = scmp.lt.s32.totalorder %s1272_s28, %s1265_s5 }
  0x83   : > { %p1269_p4 = pneg %p1268_p1  ;;  %p1275_p8 = por %p1274_p13, %p1273_p2 }
  0x85   : > { %p1276_p9 = pnand %p1275_p8, %p1269_p4 }
  0x87   : > { %1279 = shalt.err (!%p1276_p9)
}
  0x88   : > { %1028 = dma.hbm_to_vmem [thread:$0]  (!%p1766_p7), %s1762_s8, 128, %s259_s23, %s1642_s6  }
  0x89   : > { %p1990_p3 = scmp.ne.s32.totalorder %s1979_s19, 0 }
  0x8a   : > { %s281_s15 = sand.u32 (!%p1990_p3), 1, %s1426_s9   ;;  %p1991_p5 = scmp.ne.s32.totalorder (!%p1990_p3), %s1982_s21, 0 }
  0x8b   : > { %279 = sbr.rel (%p1990_p3) target bundleno = 1016 (0x3f8), region = 36  ;;  %s867_s16 = sshll.u32 (!%p1990_p3), %s281_s15, 3 }
  0x8c   : > { %s282_s26 = scalar_lea.sflag (!%p1990_p3), [#allocation6], %s281_s15  ;;  %s285_s20 = scalar_lea.vmem (!%p1990_p3), [#allocation5], %s867_s16 }
  0x92   : > { %1369 = dma.done.wait (%p1991_p5), %s282_s26, 128  }
  0x93   : > { %1371 = vsyncadd (%p1991_p5), %s282_s26, 4294967168  ;;  %s290_s3 = sand.u32 1, %s1566_s14   ;;  %s292_s12 = sand.u32 1, %s1414_s1  }
  0x94   : > { %s868_s6 = sshll.u32 %s292_s12, 3  ;;  %s291_s8 = scalar_lea.sflag [#allocation9], %s290_s3 }
  0x95   : > { %s294_s19 = scalar_lea.vmem [#allocation8], %s868_s6  ;;  %p1992_p13 = scmp.ne.s32.totalorder %s1968_s22, 0 }
  0x97   : > { %1373 = dma.done.wait (%p1992_p13), %s291_s8, 128  }
  0x98   : > { %1375 = vsyncadd (%p1992_p13), %s291_s8, 4294967168  ;;  %s301_s23 = sand.u32 1, %s1402_s29   ;;  %p1993_p7 = scmp.ne.s32.totalorder %s1987_s30, 0 }
  0x99   : > { %s1806_s18 = sshll.u32 %s301_s23, 3 }
  0x9a   : > { %s303_s21 = scalar_lea.vmem [#allocation10], %s1806_s18 }
  0x9b   : > { %1377 = dma.done.wait (%p1993_p7), %s291_s8, 128  }
  0x9c   : > { %1379 = vsyncadd (%p1993_p7), %s291_s8, 4294967168  ;;  %v357_v0 = vld [vmem:[%s285_s20] sm:$0xff]  ;;  %v358_v1 = vld [vmem:[%s294_s19] sm:$0xff]  ;;  %vm393_vm0 = vcmask 64512   ;;  %v1447_v18 = vmov 0.0|0.0   ;;  %vm1448_vm1 = vmmov 0  }
  0x9d   : > { %361 = vxpose.xlu0.b32.start.end [1/1] (short) %v357_v0, 128  ;;  %924 = vmatprep.subr.mxu0 %v358_v1  ;;  %v1449_v19 = vmov 0.0   ;;  %s1994_s14 = sld [smem:[#allocation19_spill]]  ;;  %s1835_s22 = sld [smem:[#allocation4]] }
  0x9e   : > { %925 = vmatpush3.msra.mxu0 %v358_v1  ;;  %985 = vmatprep.subr.bf16.mxu1 %v1447_v18  ;;  %s1995_s16 = sld [smem:[#allocation26_spill]]  ;;  %s1996_s20 = sld [smem:[#allocation17_spill]] }
  0x9f   : > { %982 = vmatprep.mubr.msk.f32.mxu1 %vm1448_vm1, %v1449_v19  ;;  %s689_s3 = sld [smem:[#allocation3]]  ;;  %s1997_s12 = sld [smem:[#allocation22_spill]] }
  0xa3   : > { %p349_p11 = scmp.lt.s32.totalorder %s1994_s14, 1  ;;  %p351_p10 = scmp.lt.s32.totalorder %s1835_s22, 0 }
  0xa4   : > { %s343_s6 = sand.u32 1, %s1996_s20   ;;  %s887_s19 = sshll.u32 %s1994_s14, 4 }
  0xa5   : > { %s350_s30 = scalar_select %p349_p11, %s1994_s14, 1 }
  0xa6   : > { %s352_s5 = scalar_select %p351_p10, %s1835_s22, 0 }
  0xa7   : > { %p691_p0 = scmp.eq.s32.totalorder %s689_s3, %s1835_s22  ;;  %s344_s23 = scalar_lea.vmem [#allocation11], %s343_s6 }
  0xa8   : > { %s353_s11 = sadd.s32 %s352_s5, %s350_s30  ;;  %s720_s18 = sshll.u32 %s344_s23, 4  ;;  %s1856_s18 = int_to_ptr.vmem [resolvable:$true] %s720_s18 }
  0xa9   : > { %s870_s17 = sshll.u32 %s353_s11, 3  ;;  %s707_s15 = scalar_lea.sflag [#allocation7], %s343_s6 }
  0xaa   : > { %s355_s26 = scalar_lea.vmem %s1995_s16, %s870_s17  ;;  %s1998_s17 = sld [smem:[#allocation27_spill]] }
  0xab   : > { %s692_s8 = scalar_select %p691_p0, 0.5, 1.0 }
  0xac   : > { %s1280_s22 = scalar_lea.vmem %s1856_s18, 16  ;;  %p1999_p12 = scmp.ne.s32.totalorder %s1997_s12, 0 }
  0xad   : > { %p1281_p6 = scmp.ne.s32.totalorder %s1856_s18, %s1280_s22  ;;  %s1450_s14 = smov [#allocation11]  }
  0xae   : > { %s1284_s16 = sshll.u32 %s1450_s14, 4  ;;  %s1285_s16 = int_to_ptr.vmem [resolvable:$false] %s1284_s16 }
  0xaf   : > { %p1282_p1 = pnand %p1281_p6, %p1999_p12  ;;  %p1287_p2 = scmp.lt.s32.totalorder %s1856_s18, %s1285_s16 }
  0xb0   : > { %s1854_s28 = scalar_lea.hbm %s1998_s17, %s887_s19 }
  0xb1   : > { %p1283_p4 = pneg %p1282_p1 }
 0x11d   : > { %v377_v2 = vpop.trf.xlu0 }
 0x11e   : > { %926 = vmatprep.mubr.msk.f32.mxu0 %vm393_vm0, %v377_v2 }
 0x121   : > { %v378_v3 = vpop.trf.xlu0 }
 0x122   : > { %927 = vmatmul.mubr.msk.f32.vlgmr.msra.gmra.mrb[0].mxu0 %vm393_vm0, %v378_v3 }
 0x125   : > { %v379_v4 = vpop.trf.xlu0 }
 0x126   : > { %929 = vmatprep.mubr.msk.f32.mxu0 %vm393_vm0, %v379_v4 }
 0x129   : > { %v380_v5 = vpop.trf.xlu0 }
 0x12a   : > { %930 = vmatmul.mubr.msk.f32.gmra.mrb[2].mxu0 %vm393_vm0, %v380_v5 }
 0x12d   : > { %v381_v6 = vpop.trf.xlu0 }
 0x12e   : > { %932 = vmatprep.mubr.msk.f32.mxu0 %vm393_vm0, %v381_v6 }
 0x131   : > { %v382_v7 = vpop.trf.xlu0 }
 0x132   : > { %933 = vmatmul.mubr.msk.f32.gmra.mrb[4].mxu0 %vm393_vm0, %v382_v7 }
 0x135   : > { %v383_v8 = vpop.trf.xlu0 }
 0x136   : > { %935 = vmatprep.mubr.msk.f32.mxu0 %vm393_vm0, %v383_v8 }
 0x139   : > { %v384_v9 = vpop.trf.xlu0 }
 0x13a   : > { %936 = vmatmul.mubr.msk.f32.gmra.mrb[6].mxu0 %vm393_vm0, %v384_v9 }
 0x13d   : > { %v385_v10 = vpop.trf.xlu0 }
 0x13e   : > { %938 = vmatprep.mubr.msk.f32.mxu0 %vm393_vm0, %v385_v10 }
 0x141   : > { %v386_v11 = vpop.trf.xlu0 }
 0x142   : > { %939 = vmatmul.mubr.msk.f32.gmra.mrb[8].mxu0 %vm393_vm0, %v386_v11 }
 0x145   : > { %v387_v12 = vpop.trf.xlu0 }
 0x146   : > { %941 = vmatprep.mubr.msk.f32.mxu0 %vm393_vm0, %v387_v12  ;;  %v360_v12 = vld [vmem:[%s355_s26] sm:$0xff]  ;;  %s1286_s26 = scalar_lea.vmem %s1285_s16, 32 }
 0x147   : > { %p1288_p8 = scmp.lt.s32.totalorder %s1286_s26, %s1280_s22 }
 0x149   : > { %v388_v13 = vpop.trf.xlu0  ;;  %p1289_p9 = por %p1288_p8, %p1287_p2 }
 0x14a   : > { %942 = vmatmul.mubr.msk.f32.gmra.mrb[10].mxu0 %vm393_vm0, %v388_v13  ;;  %v359_v13 = vld [vmem:[%s303_s21] sm:$0xff] }
 0x14b   : > { %p1290_p3 = pnand %p1289_p9, %p1283_p4 }
 0x14d   : > { %v389_v14 = vpop.trf.xlu0 }
 0x14e   : > { %944 = vmatprep.mubr.msk.f32.mxu0 %vm393_vm0, %v389_v14 }
 0x151   : > { %v390_v15 = vpop.trf.xlu0 }
 0x152   : > { %945 = vmatmul.mubr.msk.f32.gmra.mrb[12].mxu0 %vm393_vm0, %v390_v15 }
 0x155   : > { %v391_v16 = vpop.trf.xlu0 }
 0x156   : > { %947 = vmatprep.mubr.msk.f32.mxu0 %vm393_vm0, %v391_v16 }
 0x159   : > { %v392_v17 = vpop.trf.xlu0 }
 0x15a   : > { %948 = vmatmul.mubr.msk.f32.gmra.mrb[14].mxu0 %vm393_vm0, %v392_v17 }
 0x1f5   : > { %v928_v20 = vpop.f32.mrb[0].mxu0 }
 0x1f6   : > { %v589_v21 = vmul.f32 1.442695, %v928_v20  ;;  %v508_v22 = vpop.f32.mrb[1].mxu0 }
 0x1f7   : > { %v587_v23 = vmul.f32 1.442695, %v508_v22 }
 0x1f8   : > { %1158 = vpow2.f32 %v589_v21 }
 0x1f9   : > { %1160 = vpow2.f32 %v587_v23 }
 0x1fd   : > { %v931_v24 = vpop.f32.mrb[2].mxu0 }
 0x1fe   : > { %v593_v25 = vmul.f32 1.442695, %v931_v24  ;;  %v518_v26 = vpop.f32.mrb[3].mxu0 }
 0x1ff   : > { %v591_v27 = vmul.f32 1.442695, %v518_v26 }
 0x200   : > { %1162 = vpow2.f32 %v593_v25 }
 0x201   : > { %1164 = vpow2.f32 %v591_v27 }
 0x202   : > { %v1159_v28 = vpop.eup %1158 }
 0x203   : > { %v1161_v29 = vpop.eup %1160 }
 0x204   : > { %v986_v30 = vpack.c.bf16 %v1159_v28, %v1161_v29 }
 0x205   : > { %v934_v31 = vpop.f32.mrb[4].mxu0 }
 0x206   : > { %v597_v32 = vmul.f32 1.442695, %v934_v31  ;;  %v528_v33 = vpop.f32.mrb[5].mxu0  ;;  %987 = vmatpush3.bf16.xpose.msra.mxu1 %v986_v30 }
 0x207   : > { %v595_v34 = vmul.f32 1.442695, %v528_v33  ;;  %988 = vmatprep.subr.bf16.mxu1 %v1447_v18 }
 0x208   : > { %1166 = vpow2.f32 %v597_v32 }
 0x209   : > { %1168 = vpow2.f32 %v595_v34 }
 0x20a   : > { %v1163_v35 = vpop.eup %1162 }
 0x20b   : > { %v1165_v36 = vpop.eup %1164 }
 0x20c   : > { %v989_v37 = vpack.c.bf16 %v1163_v35, %v1165_v36 }
 0x20d   : > { %v937_v38 = vpop.f32.mrb[6].mxu0 }
 0x20e   : > { %v601_v39 = vmul.f32 1.442695, %v937_v38  ;;  %v538_v40 = vpop.f32.mrb[7].mxu0  ;;  %990 = vmatpush3.bf16.xpose.msra.mxu1 %v989_v37 }
 0x20f   : > { %v599_v41 = vmul.f32 1.442695, %v538_v40  ;;  %991 = vmatprep.subr.bf16.mxu1 %v1447_v18 }
 0x210   : > { %1170 = vpow2.f32 %v601_v39 }
 0x211   : > { %1172 = vpow2.f32 %v599_v41 }
 0x212   : > { %v1167_v42 = vpop.eup %1166 }
 0x213   : > { %v1169_v43 = vpop.eup %1168 }
 0x214   : > { %v992_v44 = vpack.c.bf16 %v1167_v42, %v1169_v43 }
 0x215   : > { %v940_v45 = vpop.f32.mrb[8].mxu0 }
 0x216   : > { %v605_v46 = vmul.f32 1.442695, %v940_v45  ;;  %v548_v47 = vpop.f32.mrb[9].mxu0  ;;  %993 = vmatpush3.bf16.xpose.msra.mxu1 %v992_v44 }
 0x217   : > { %v603_v48 = vmul.f32 1.442695, %v548_v47  ;;  %994 = vmatprep.subr.bf16.mxu1 %v1447_v18 }
 0x218   : > { %1174 = vpow2.f32 %v605_v46 }
 0x219   : > { %1176 = vpow2.f32 %v603_v48 }
 0x21a   : > { %v1171_v49 = vpop.eup %1170 }
 0x21b   : > { %v1173_v50 = vpop.eup %1172 }
 0x21c   : > { %v995_v51 = vpack.c.bf16 %v1171_v49, %v1173_v50 }
 0x21d   : > { %v943_v52 = vpop.f32.mrb[10].mxu0 }
 0x21e   : > { %v609_v53 = vmul.f32 1.442695, %v943_v52  ;;  %v558_v54 = vpop.f32.mrb[11].mxu0  ;;  %996 = vmatpush3.bf16.xpose.msra.mxu1 %v995_v51 }
 0x21f   : > { %v607_v55 = vmul.f32 1.442695, %v558_v54  ;;  %997 = vmatprep.subr.bf16.mxu1 %v1447_v18 }
 0x220   : > { %1178 = vpow2.f32 %v609_v53 }
 0x221   : > { %1180 = vpow2.f32 %v607_v55 }
 0x222   : > { %v1175_v56 = vpop.eup %1174 }
 0x223   : > { %v1177_v57 = vpop.eup %1176 }
 0x224   : > { %v998_v58 = vpack.c.bf16 %v1175_v56, %v1177_v57 }
 0x225   : > { %v946_v59 = vpop.f32.mrb[12].mxu0 }
 0x226   : > { %v613_v60 = vmul.f32 1.442695, %v946_v59  ;;  %v568_v61 = vpop.f32.mrb[13].mxu0  ;;  %999 = vmatpush3.bf16.xpose.msra.mxu1 %v998_v58 }
 0x227   : > { %v611_v62 = vmul.f32 1.442695, %v568_v61  ;;  %1000 = vmatprep.subr.bf16.mxu1 %v1447_v18 }
 0x228   : > { %1182 = vpow2.f32 %v613_v60 }
 0x229   : > { %1184 = vpow2.f32 %v611_v62 }
 0x22a   : > { %v1179_v63 = vpop.eup %1178 }
 0x22b   : > { %v1181_v0 = vpop.eup %1180 }
 0x22c   : > { %v1001_v1 = vpack.c.bf16 %v1179_v63, %v1181_v0 }
 0x22d   : > { %v949_v2 = vpop.f32.mrb[14].mxu0 }
 0x22e   : > { %v617_v3 = vmul.f32 1.442695, %v949_v2  ;;  %v578_v4 = vpop.f32.mrb[15].mxu0  ;;  %1002 = vmatpush3.bf16.xpose.msra.mxu1 %v1001_v1 }
 0x22f   : > { %v615_v5 = vmul.f32 1.442695, %v578_v4  ;;  %1003 = vmatprep.subr.bf16.mxu1 %v1447_v18 }
 0x230   : > { %1186 = vpow2.f32 %v617_v3 }
 0x231   : > { %1188 = vpow2.f32 %v615_v5 }
 0x232   : > { %v1183_v6 = vpop.eup %1182 }
 0x233   : > { %v1185_v7 = vpop.eup %1184 }
 0x234   : > { %v1004_v8 = vpack.c.bf16 %v1183_v6, %v1185_v7 }
 0x236   : > { %1005 = vmatpush3.bf16.xpose.msra.mxu1 %v1004_v8 }
 0x237   : > { %1006 = vmatprep.subr.bf16.mxu1 %v1447_v18 }
 0x23a   : > { %v1187_v9 = vpop.eup %1186 }
 0x23b   : > { %v1189_v10 = vpop.eup %1188 }
 0x23c   : > { %v1007_v11 = vpack.c.bf16 %v1187_v9, %v1189_v10 }
 0x23e   : > { %1008 = vmatpush3.bf16.xpose.msra.mxu1 %v1007_v11 }
 0x245   : > { %983 = vmatmul.mubr.f32.vlgmr.msra.gmra.mrb[0].mxu1 %v360_v12 }
 0x318   : > { %v685_v14 = vpop.f32.mrb[0].mxu1 }
 0x319   : > { %v693_v15 = vmul.f32 %v685_v14, %v359_v13  ;;  %v984_v16 = vpop.f32.mrb[1].mxu1 }
 0x31b   : > { %694 = vadd.xlane.f32.xlu0 %v693_v15 }
 0x3a8   : > { %v695_v17 = vpop.xlane.xlu0 %694 }
 0x3a9   : > { %v696_v18 = vrot.slane %v695_v17, 4 }
 0x3ab   : > { %v697_v19 = vadd.f32 %v696_v18, %v695_v17 }
 0x3ad   : > { %v698_v20 = vrot.slane %v697_v19, 2 }
 0x3af   : > { %v699_v21 = vadd.f32 %v698_v20, %v697_v19 }
 0x3b1   : > { %v700_v22 = vrot.slane %v699_v21, 1 }
 0x3b3   : > { %v701_v23 = vadd.f32 %v700_v22, %v699_v21 }
 0x3b5   : > { %1009 = vpush %v701_v23 }
 0x3e6   : > { %s1010_s21 = spop %1009 }
 0x3e7   : > { %s703_s30 = smul.f32 %s1010_s21, %s692_s8 }
 0x3e9   : > { %v704_v24 = vstv %s703_s30 }
 0x3ea   : > { %705 = vst [vmem:[%s344_s23] sm:$0x1] %v704_v24 }
 0x3eb   : > { %1293 = shalt.err (!%p1290_p3)
}
 0x3ec   : > { %s1294_s20 = scalar_lea.hbm %s1854_s28, 16  ;;  %s1298_s8 = scalar_lea.hbm %s1998_s17, 32 }
 0x3ed   : > { %p1295_p5 = scmp.ne.s32.totalorder %s1854_s28, %s1294_s20  ;;  %p1299_p11 = scmp.lt.u32.totalorder %s1854_s28, %s1998_s17 }
 0x3ee   : > { %p1300_p10 = scmp.lt.u32.totalorder %s1298_s8, %s1294_s20  ;;  %p1302_p6 = scmp.lt.u32.totalorder %s1294_s20, %s1854_s28 }
 0x3ef   : > { %p1296_p13 = pnand %p1295_p5, %p1999_p12 }
 0x3f0   : > { %p1301_p0 = por %p1300_p10, %p1299_p11 }
 0x3f1   : > { %p1297_p7 = pneg %p1296_p13 }
 0x3f2   : > { %p1303_p1 = por %p1302_p6, %p1301_p0 }
 0x3f4   : > { %p1304_p4 = pnand %p1303_p1, %p1297_p7 }
 0x3f6   : > { %1307 = shalt.err (!%p1304_p4)
}
 0x3f7   : > { %1017 = dma.vmem_to_hbm [thread:$0]  (%p1999_p12), %s1856_s18, 16, %s1854_s28, %s707_s15  }
 0x3f8 PF: > { %s2000_s21 = sld [smem:[#allocation16_spill]]  ;;  %p2001_p2 = scmp.ne.s32.totalorder %s1974_s25, 0 }
 0x3f9   : > { %p2002_p8 = scmp.ge.s32.totalorder %s1442_s13, 2 }
 0x3fb   : > { %p1030_p9 = pnand %p2002_p8, %p2001_p2 }
 0x3fe   : > { %s732_s30 = sand.u32 1, %s2000_s21  }
 0x3ff   : > { %s733_s5 = scalar_lea.sflag [#allocation7], %s732_s30 }
 0x400   : > { %1381 = dma.done.wait (!%p1030_p9), %s733_s5, 16  }
 0x401   : > { %1383 = vsyncadd (!%p1030_p9), %s733_s5, 4294967280  ;;  %s27_s13 = sadd.s32 1, %s1442_s13   ;;  %s2004_s25 = sld [smem:[#allocation17_spill]] }
 0x402   : > { %p1885_p3 = scmp.ge.s32.totalorder %s27_s13, 4   ;;  %s2005_s12 = sld [smem:[#allocation23_spill]] }
 0x403   : > { %s2006_s18 = sld [smem:[#allocation18_spill]]  ;;  %s2007_s15 = sld [smem:[#allocation24_spill]] }
 0x404   : > { %s2008_s22 = smov %s1710_s7  ;;  %s2009_s14 = sld [smem:[#allocation20_spill]] }
 0x405   : > { %s2010_s16 = sld [smem:[#allocation21_spill]]  ;;  %s2012_s26 = smov %s1394_s27 }
 0x406   : > { %s2014_s28 = smov %s1402_s29  ;;  %s2015_s29 = smov %s1406_s0 }
 0x407   : > { %s2016_s0 = smov %s1743_s24  ;;  %s2017_s30 = smov %s1414_s1 }
 0x408   : > { %s2013_s27 = smov %s2005_s12  ;;  %s2020_s8 = smov %s1426_s9 }
 0x409   : > { %s2018_s1 = smov %s2006_s18  ;;  %s2019_s7 = smov %s2007_s15 }
 0x40a   : > { %s2021_s9 = smov %s1430_s10  ;;  %s2022_s10 = smov %s2008_s22 }
 0x40b   : > { %s2023_s11 = smov %s2009_s14  ;;  %s2024_s12 = smov %s2010_s16 }
 0x40c   :  { %26 = sbr.rel (!%p1885_p3) target bundleno = 19 (0x13), region = 108 }
 0x413   :  { %737 = vsyncpa [#allocation6], 1 }
 0x414   :  { %739 = vsyncpa [#allocation6 + $0x1], 1 }
 0x415   :  { %740 = vsyncpa [#allocation9], 1 }
 0x416   :  { %742 = vsyncpa [#allocation9 + $0x1], 1 }
 0x417   :  { %743 = vsyncpa [#allocation7], 1 }
 0x418   :  { %745 = vsyncpa [#allocation7 + $0x1], 1 }

</bundles_post_ra>
